<compile_context>
chip_gen: v5e
topology: v5e:2x2
jax: 0.10.0
libtpu: 0.0.40
codegen_flags: <defaults>
</compile_context>

<pallas_src>
import functools

import jax
import jax.numpy as jnp
from jax.experimental import pallas as pl
from jax.experimental.pallas import tpu as pltpu


def _leaky_relu(x, slope=0.01):
    return jnp.where(x >= 0, x, slope * x)


def temporal_block_kernel(x_ref, w1_ref, b1_ref, w2_ref, b2_ref, wd_ref,
                          bd_ref, o_ref, *, K, dil, L):
    """One batch-block per grid step; batch*time flattened on the lane axis.

    x_ref  : (C_in,  NB*L)       bf16   (batch-major segments of length L)
    w1_ref : (C_out, K*C_in)     bf16   fused im2col conv1 weight (k-major)
    w2_ref : (C_out, K*C_out)    bf16   fused im2col conv2 weight (k-major)
    wd_ref : (C_out, C_in)       bf16   1x1 downsample weight
    b*_ref : (C_out, 1)          f32    biases
    o_ref  : (C_out, NB*L)       f32
    """
    x_bf = x_ref[...]                              # (C_in, NBL) bf16
    nbl = x_bf.shape[-1]
    # Position of each lane within its length-L batch segment (for causal mask).
    pos = jax.lax.broadcasted_iota(jnp.int32, (1, nbl), 1) % L

    def im2col(a):
        """a: (C, NBL) f32 -> causal K-tap stack (C*K, NBL) in bf16."""
        cols = []
        for k in range(K):
            s = (K - 1 - k) * dil                  # causal right-shift of tap k
            if s == 0:
                cols.append(a)
            else:
                # Right-shift on the lane axis via XLU rotate, then zero the
                # first s positions of every batch segment (the causal pad
                # region / cross-segment wraparound).
                rolled = pltpu.roll(a, shift=s, axis=1)
                cols.append(jnp.where(pos >= s, rolled, 0.0))
        return jnp.concatenate(cols, axis=0).astype(jnp.bfloat16)

    # ---- conv1 (causal dilated, single fused MXU matmul) + bias + LeakyReLU --
    h1 = jnp.dot(w1_ref[...], im2col(x_bf.astype(jnp.float32)),
                 preferred_element_type=jnp.float32)
    h1 = _leaky_relu(h1 + b1_ref[...])
    # TODO(synk): nn.Dropout is identity in eval mode; not implemented.

    # ---- conv2 (causal dilated, single fused MXU matmul) + bias + LeakyReLU --
    h2 = jnp.dot(w2_ref[...], im2col(h1), preferred_element_type=jnp.float32)
    h2 = _leaky_relu(h2 + b2_ref[...])

    # ---- residual: 1x1 downsample conv ---------------------------------------
    res = jnp.dot(wd_ref[...], x_bf, preferred_element_type=jnp.float32)
    res = res + bd_ref[...]

    o_ref[...] = _leaky_relu(h2 + res).astype(o_ref.dtype)


def _pick_batch_block(N, L, target_lanes=512):
    """Batch-block size NB: lane-dense (NB*L >= target, multiple of 128) blocks
    when possible, otherwise one full-batch block (full-array dims are always a
    legal BlockSpec)."""
    for d in range(1, N):
        if N % d == 0 and (d * L) % 128 == 0 and d * L >= target_lanes:
            return d
    return N
    # TODO(synk): for very large N*L, also tile the time axis (with a pad halo).


def temporal_block(x, w1, b1, w2, b2, wd, bd, *, kernel_size, dilation, padding):
    """x: (N, C_in, L) float32. Returns (N, C_out, L) float32."""
    N, C_in, L = x.shape
    C_out = w1.shape[0]
    K = kernel_size
    assert padding == dilation * (K - 1), \
        "TCN causal-conv convention: padding = dilation * (kernel_size - 1)"

    NB = _pick_batch_block(N, L)
    NBL = NB * L

    # Layout plumbing (wrapper side): channel-major, batch*time on the lane axis.
    x2d = x.transpose(1, 0, 2).reshape(C_in, N * L).astype(jnp.bfloat16)
    # Fuse the K taps into the contraction dim (k-major, matches in-kernel stack).
    w1f = w1.transpose(0, 2, 1).reshape(C_out, K * C_in).astype(jnp.bfloat16)
    w2f = w2.transpose(0, 2, 1).reshape(C_out, K * C_out).astype(jnp.bfloat16)
    wdf = wd.astype(jnp.bfloat16)
    b1c = b1.reshape(C_out, 1).astype(jnp.float32)
    b2c = b2.reshape(C_out, 1).astype(jnp.float32)
    bdc = bd.reshape(C_out, 1).astype(jnp.float32)

    kern = functools.partial(temporal_block_kernel, K=K, dil=dilation, L=L)

    flops = 2 * N * L * C_out * (K * C_in + K * C_out + C_in)
    bytes_accessed = (x2d.size * 2 + N * C_out * L * 4
                      + (w1f.size + w2f.size + wdf.size) * 2
                      + (b1c.size + b2c.size + bdc.size) * 4)

    out2d = pl.pallas_call(
        kern,
        out_shape=jax.ShapeDtypeStruct((C_out, N * L), jnp.float32),
        grid_spec=pltpu.PrefetchScalarGridSpec(
            num_scalar_prefetch=0,
            grid=(N // NB,),
            in_specs=[
                pl.BlockSpec((C_in, NBL), lambda n: (0, n)),
                pl.BlockSpec((C_out, K * C_in), lambda n: (0, 0)),
                pl.BlockSpec((C_out, 1), lambda n: (0, 0)),
                pl.BlockSpec((C_out, K * C_out), lambda n: (0, 0)),
                pl.BlockSpec((C_out, 1), lambda n: (0, 0)),
                pl.BlockSpec((C_out, C_in), lambda n: (0, 0)),
                pl.BlockSpec((C_out, 1), lambda n: (0, 0)),
            ],
            out_specs=pl.BlockSpec((C_out, NBL), lambda n: (0, n)),
        ),
        compiler_params=pltpu.CompilerParams(
            dimension_semantics=("parallel",),
            vmem_limit_bytes=32 * 1024 * 1024),
        cost_estimate=pl.CostEstimate(flops=flops, transcendentals=0,
                                      bytes_accessed=bytes_accessed),
    )(x2d, w1f, b1c, w2f, b2c, wdf, bdc)

    # Undo the layout plumbing: (C_out, N*L) -> (N, C_out, L).
    return out2d.reshape(C_out, N, L).transpose(1, 0, 2)


def weight_norm_effective(v, g):
    """PyTorch weight_norm (dim=0): w = g * v / ||v||, norm per out-channel."""
    norm = jnp.sqrt(jnp.sum(v * v, axis=(1, 2), keepdims=True))
    return g.reshape(-1, 1, 1) * v / norm


def _ref_forward(x, w1, b1, w2, b2, wd, bd, pad, dil):
    """Pure-JAX reference mirroring the PyTorch forward (eval mode), with the
    same bf16 operand / f32 accumulation quantization as the kernel."""
    dn = ('NCH', 'OIH', 'NCH')
    bf16, f32 = jnp.bfloat16, jnp.float32

    def conv_chomp(inp, w, b):
        y = jax.lax.conv_general_dilated(
            inp.astype(bf16), w.astype(bf16), window_strides=(1,),
            padding=[(pad, pad)], rhs_dilation=(dil,), dimension_numbers=dn,
            preferred_element_type=f32)
        y = y[:, :, :-pad]                          # Chomp1d
        return y + b.reshape(1, -1, 1)

    h1 = _leaky_relu(conv_chomp(x, w1, b1))
    h2 = _leaky_relu(conv_chomp(h1, w2, b2))
    res = jax.lax.conv_general_dilated(
        x.astype(bf16), wd[:, :, None].astype(bf16), window_strides=(1,),
        padding=[(0, 0)], dimension_numbers=dn, preferred_element_type=f32)
    res = res + bd.reshape(1, -1, 1)
    return _leaky_relu(h2 + res)


if __name__ == "__main__":
    # Module hyperparams (small, TCN-style).
    N, C_in, C_out, L = 2, 4, 8, 16
    kernel_size, stride, dilation = 3, 1, 2
    padding = (kernel_size - 1) * dilation          # = 4
    # dropout = 0.1 -> eval-mode identity

    key = jax.random.PRNGKey(0)
    k = jax.random.split(key, 8)

    x = jax.random.normal(k[0], (N, C_in, L), jnp.float32)

    # weight_norm parameterization: v (direction) and g (magnitude).
    v1 = 0.01 * jax.random.normal(k[1], (C_out, C_in, kernel_size), jnp.float32)
    g1 = 0.5 + jax.random.uniform(k[2], (C_out,), jnp.float32)
    w1 = weight_norm_effective(v1, g1)
    b1 = 0.1 * jax.random.normal(k[3], (C_out,), jnp.float32)

    v2 = 0.01 * jax.random.normal(k[4], (C_out, C_out, kernel_size), jnp.float32)
    g2 = 0.5 + jax.random.uniform(k[5], (C_out,), jnp.float32)
    w2 = weight_norm_effective(v2, g2)
    b2 = 0.1 * jax.random.normal(k[6], (C_out,), jnp.float32)

    # downsample (1x1 conv) — exists because n_inputs != n_outputs.
    wd = 0.01 * jax.random.normal(k[7], (C_out, C_in), jnp.float32)
    bd = jnp.zeros((C_out,), jnp.float32)

    out = temporal_block(x, w1, b1, w2, b2, wd, bd,
                         kernel_size=kernel_size, dilation=dilation,
                         padding=padding)
    out = jax.block_until_ready(out)

    ref = _ref_forward(x, w1, b1, w2, b2, wd, bd, padding, dilation)
    assert out.shape == (N, C_out, L)
    assert jnp.allclose(out, ref, atol=1e-3, rtol=1e-3), \
        f"max abs err {jnp.max(jnp.abs(out - ref))}"

    print("KERNEL_OK")
</pallas_src>

<mosaic_0001>
module attributes {stable_mosaic.version = 11 : i64} {
  func.func @temporal_block_kernel(%arg0: i32, %arg1: memref<4x32xbf16, #tpu.memory_space<vmem>>, %arg2: memref<8x12xbf16, #tpu.memory_space<vmem>>, %arg3: memref<8x1xf32, #tpu.memory_space<vmem>>, %arg4: memref<8x24xbf16, #tpu.memory_space<vmem>>, %arg5: memref<8x1xf32, #tpu.memory_space<vmem>>, %arg6: memref<8x4xbf16, #tpu.memory_space<vmem>>, %arg7: memref<8x1xf32, #tpu.memory_space<vmem>>, %arg8: memref<8x32xf32, #tpu.memory_space<vmem>>) attributes {dimension_semantics = [#tpu.dimension_semantics<parallel>], iteration_bounds = array<i64: 1>, scalar_prefetch = 0 : i64, scratch_operands = 0 : i64, tpu.core_type = #tpu.core_type<tc>, window_params = [{transform_indices = @transform_0, window_bounds = array<i64: 4, 32>}, {pipeline_mode = #tpu.pipeline_mode<synchronous>, transform_indices = @transform_1, window_bounds = array<i64: 8, 12>}, {pipeline_mode = #tpu.pipeline_mode<synchronous>, transform_indices = @transform_2, window_bounds = array<i64: 8, 1>}, {pipeline_mode = #tpu.pipeline_mode<synchronous>, transform_indices = @transform_3, window_bounds = array<i64: 8, 24>}, {pipeline_mode = #tpu.pipeline_mode<synchronous>, transform_indices = @transform_4, window_bounds = array<i64: 8, 1>}, {pipeline_mode = #tpu.pipeline_mode<synchronous>, transform_indices = @transform_5, window_bounds = array<i64: 8, 4>}, {pipeline_mode = #tpu.pipeline_mode<synchronous>, transform_indices = @transform_6, window_bounds = array<i64: 8, 1>}, {transform_indices = @transform_7, window_bounds = array<i64: 8, 32>}]} {
    %c0 = arith.constant 0 : index
    %c0_0 = arith.constant 0 : index
    %0 = vector.load %arg1[%c0, %c0_0] : memref<4x32xbf16, #tpu.memory_space<vmem>>, vector<4x32xbf16>
    %1 = tpu.iota {dimensions = array<i32: 1>} : vector<1x32xi32>
    %c16_i32 = arith.constant 16 : i32
    %c0_i32 = arith.constant 0 : i32
    %2 = arith.cmpi eq, %c16_i32, %c0_i32 : i32
    %c1_i32 = arith.constant 1 : i32
    %3 = arith.select %2, %c1_i32, %c16_i32 : i32
    %4 = vector.broadcast %3 : i32 to vector<1x32xi32>
    %5 = arith.remsi %1, %4 : vector<1x32xi32>
    %c0_i32_1 = arith.constant 0 : i32
    %6 = vector.broadcast %c0_i32_1 : i32 to vector<1x32xi32>
    %7 = arith.cmpi ne, %5, %6 : vector<1x32xi32>
    %c0_i32_2 = arith.constant 0 : i32
    %8 = vector.broadcast %c0_i32_2 : i32 to vector<1x32xi32>
    %9 = arith.cmpi slt, %5, %8 : vector<1x32xi32>
    %c0_i32_3 = arith.constant 0 : i32
    %10 = arith.cmpi slt, %3, %c0_i32_3 : i32
    %11 = vector.broadcast %10 : i1 to vector<1x32xi1>
    %12 = vector.broadcast %11 : vector<1x32xi1> to vector<1x32xi1>
    %13 = arith.xori %9, %12 : vector<1x32xi1>
    %14 = arith.andi %13, %7 : vector<1x32xi1>
    %15 = vector.broadcast %3 : i32 to vector<1x32xi32>
    %16 = arith.addi %5, %15 : vector<1x32xi32>
    %17 = arith.select %14, %16, %5 : vector<1x32xi1>, vector<1x32xi32>
    %c0_4 = arith.constant 0 : index
    %c0_5 = arith.constant 0 : index
    %18 = vector.load %arg2[%c0_4, %c0_5] : memref<8x12xbf16, #tpu.memory_space<vmem>>, vector<8x12xbf16>
    %19 = arith.extf %0 : vector<4x32xbf16> to vector<4x32xf32>
    %c4_i32 = arith.constant 4 : i32
    %20 = tpu.dynamic_rotate %19 by %c4_i32 dim 1 : vector<4x32xf32>, i32 -> vector<4x32xf32>
    %c4_i32_6 = arith.constant 4 : i32
    %21 = vector.broadcast %c4_i32_6 : i32 to vector<1x32xi32>
    %22 = arith.cmpi sge, %17, %21 : vector<1x32xi32>
    %cst = arith.constant 0.000000e+00 : f32
    %23 = vector.shape_cast %22 : vector<1x32xi1> to vector<1x32xi1>
    %24 = vector.broadcast %23 : vector<1x32xi1> to vector<4x32xi1>
    %25 = vector.broadcast %cst : f32 to vector<4x32xf32>
    %26 = arith.select %24, %20, %25 : vector<4x32xi1>, vector<4x32xf32>
    %c2_i32 = arith.constant 2 : i32
    %27 = tpu.dynamic_rotate %19 by %c2_i32 dim 1 : vector<4x32xf32>, i32 -> vector<4x32xf32>
    %c2_i32_7 = arith.constant 2 : i32
    %28 = vector.broadcast %c2_i32_7 : i32 to vector<1x32xi32>
    %29 = arith.cmpi sge, %17, %28 : vector<1x32xi32>
    %cst_8 = arith.constant 0.000000e+00 : f32
    %30 = vector.shape_cast %29 : vector<1x32xi1> to vector<1x32xi1>
    %31 = vector.broadcast %30 : vector<1x32xi1> to vector<4x32xi1>
    %32 = vector.broadcast %cst_8 : f32 to vector<4x32xf32>
    %33 = arith.select %31, %27, %32 : vector<4x32xi1>, vector<4x32xf32>
    %34 = tpu.concatenate %26, %33, %19 in 0 : vector<4x32xf32>, vector<4x32xf32>, vector<4x32xf32> -> vector<12x32xf32>
    %35 = arith.truncf %34 : vector<12x32xf32> to vector<12x32xbf16>
    %cst_9 = arith.constant dense<0.000000e+00> : vector<8x32xf32>
    %36 = tpu.matmul %18, %35, %cst_9 {dimension_numbers = #tpu.dot_dimension_numbers<[1], [0], [0], [1], [0, 0, 1, 1], [], []>} : vector<8x12xbf16>, vector<12x32xbf16>, vector<8x32xf32> -> vector<8x32xf32>
    %c0_10 = arith.constant 0 : index
    %c0_11 = arith.constant 0 : index
    %37 = vector.load %arg3[%c0_10, %c0_11] : memref<8x1xf32, #tpu.memory_space<vmem>>, vector<8x1xf32>
    %38 = vector.broadcast %37 : vector<8x1xf32> to vector<8x32xf32>
    %39 = arith.addf %36, %38 : vector<8x32xf32>
    %cst_12 = arith.constant 0.000000e+00 : f32
    %40 = vector.broadcast %cst_12 : f32 to vector<8x32xf32>
    %41 = arith.cmpf oge, %39, %40 : vector<8x32xf32>
    %cst_13 = arith.constant 0.00999999977 : f32
    %42 = vector.broadcast %cst_13 : f32 to vector<8x32xf32>
    %43 = arith.mulf %42, %39 : vector<8x32xf32>
    %44 = arith.select %41, %39, %43 : vector<8x32xi1>, vector<8x32xf32>
    %c0_14 = arith.constant 0 : index
    %c0_15 = arith.constant 0 : index
    %45 = vector.load %arg4[%c0_14, %c0_15] : memref<8x24xbf16, #tpu.memory_space<vmem>>, vector<8x24xbf16>
    %c4_i32_16 = arith.constant 4 : i32
    %46 = tpu.dynamic_rotate %44 by %c4_i32_16 dim 1 : vector<8x32xf32>, i32 -> vector<8x32xf32>
    %c4_i32_17 = arith.constant 4 : i32
    %47 = vector.broadcast %c4_i32_17 : i32 to vector<1x32xi32>
    %48 = arith.cmpi sge, %17, %47 : vector<1x32xi32>
    %cst_18 = arith.constant 0.000000e+00 : f32
    %49 = vector.shape_cast %48 : vector<1x32xi1> to vector<1x32xi1>
    %50 = vector.broadcast %49 : vector<1x32xi1> to vector<8x32xi1>
    %51 = vector.broadcast %cst_18 : f32 to vector<8x32xf32>
    %52 = arith.select %50, %46, %51 : vector<8x32xi1>, vector<8x32xf32>
    %c2_i32_19 = arith.constant 2 : i32
    %53 = tpu.dynamic_rotate %44 by %c2_i32_19 dim 1 : vector<8x32xf32>, i32 -> vector<8x32xf32>
    %c2_i32_20 = arith.constant 2 : i32
    %54 = vector.broadcast %c2_i32_20 : i32 to vector<1x32xi32>
    %55 = arith.cmpi sge, %17, %54 : vector<1x32xi32>
    %cst_21 = arith.constant 0.000000e+00 : f32
    %56 = vector.shape_cast %55 : vector<1x32xi1> to vector<1x32xi1>
    %57 = vector.broadcast %56 : vector<1x32xi1> to vector<8x32xi1>
    %58 = vector.broadcast %cst_21 : f32 to vector<8x32xf32>
    %59 = arith.select %57, %53, %58 : vector<8x32xi1>, vector<8x32xf32>
    %60 = tpu.concatenate %52, %59, %44 in 0 : vector<8x32xf32>, vector<8x32xf32>, vector<8x32xf32> -> vector<24x32xf32>
    %61 = arith.truncf %60 : vector<24x32xf32> to vector<24x32xbf16>
    %cst_22 = arith.constant dense<0.000000e+00> : vector<8x32xf32>
    %62 = tpu.matmul %45, %61, %cst_22 {dimension_numbers = #tpu.dot_dimension_numbers<[1], [0], [0], [1], [0, 0, 1, 1], [], []>} : vector<8x24xbf16>, vector<24x32xbf16>, vector<8x32xf32> -> vector<8x32xf32>
    %c0_23 = arith.constant 0 : index
    %c0_24 = arith.constant 0 : index
    %63 = vector.load %arg5[%c0_23, %c0_24] : memref<8x1xf32, #tpu.memory_space<vmem>>, vector<8x1xf32>
    %64 = vector.broadcast %63 : vector<8x1xf32> to vector<8x32xf32>
    %65 = arith.addf %62, %64 : vector<8x32xf32>
    %cst_25 = arith.constant 0.000000e+00 : f32
    %66 = vector.broadcast %cst_25 : f32 to vector<8x32xf32>
    %67 = arith.cmpf oge, %65, %66 : vector<8x32xf32>
    %cst_26 = arith.constant 0.00999999977 : f32
    %68 = vector.broadcast %cst_26 : f32 to vector<8x32xf32>
    %69 = arith.mulf %68, %65 : vector<8x32xf32>
    %70 = arith.select %67, %65, %69 : vector<8x32xi1>, vector<8x32xf32>
    %c0_27 = arith.constant 0 : index
    %c0_28 = arith.constant 0 : index
    %71 = vector.load %arg6[%c0_27, %c0_28] : memref<8x4xbf16, #tpu.memory_space<vmem>>, vector<8x4xbf16>
    %cst_29 = arith.constant dense<0.000000e+00> : vector<8x32xf32>
    %72 = tpu.matmul %71, %0, %cst_29 {dimension_numbers = #tpu.dot_dimension_numbers<[1], [0], [0], [1], [0, 0, 1, 1], [], []>} : vector<8x4xbf16>, vector<4x32xbf16>, vector<8x32xf32> -> vector<8x32xf32>
    %c0_30 = arith.constant 0 : index
    %c0_31 = arith.constant 0 : index
    %73 = vector.load %arg7[%c0_30, %c0_31] : memref<8x1xf32, #tpu.memory_space<vmem>>, vector<8x1xf32>
    %74 = vector.broadcast %73 : vector<8x1xf32> to vector<8x32xf32>
    %75 = arith.addf %72, %74 : vector<8x32xf32>
    %76 = arith.addf %70, %75 : vector<8x32xf32>
    %cst_32 = arith.constant 0.000000e+00 : f32
    %77 = vector.broadcast %cst_32 : f32 to vector<8x32xf32>
    %78 = arith.cmpf oge, %76, %77 : vector<8x32xf32>
    %cst_33 = arith.constant 0.00999999977 : f32
    %79 = vector.broadcast %cst_33 : f32 to vector<8x32xf32>
    %80 = arith.mulf %79, %76 : vector<8x32xf32>
    %81 = arith.select %78, %76, %80 : vector<8x32xi1>, vector<8x32xf32>
    %c0_34 = arith.constant 0 : index
    %c0_35 = arith.constant 0 : index
    %82 = vector.load %arg8[%c0_34, %c0_35] : memref<8x32xf32, #tpu.memory_space<vmem>>, vector<8x32xf32>
    tpu.vector_store %arg8[%c0_34, %c0_35], %81 {strides = array<i32>} : memref<8x32xf32, #tpu.memory_space<vmem>>, vector<8x32xf32>,
    return
  }
  func.func @transform_0(%arg0: i32) -> (i32, i32) {
    %c0_i32 = arith.constant 0 : i32
    %c0_i32_0 = arith.constant 0 : i32
    return %c0_i32, %arg0 : i32, i32
  }
  func.func @transform_1(%arg0: i32) -> (i32, i32) {
    %c0_i32 = arith.constant 0 : i32
    %c0_i32_0 = arith.constant 0 : i32
    %c0_i32_1 = arith.constant 0 : i32
    return %c0_i32, %c0_i32_0 : i32, i32
  }
  func.func @transform_2(%arg0: i32) -> (i32, i32) {
    %c0_i32 = arith.constant 0 : i32
    %c0_i32_0 = arith.constant 0 : i32
    %c0_i32_1 = arith.constant 0 : i32
    return %c0_i32, %c0_i32_0 : i32, i32
  }
  func.func @transform_3(%arg0: i32) -> (i32, i32) {
    %c0_i32 = arith.constant 0 : i32
    %c0_i32_0 = arith.constant 0 : i32
    %c0_i32_1 = arith.constant 0 : i32
    return %c0_i32, %c0_i32_0 : i32, i32
  }
  func.func @transform_4(%arg0: i32) -> (i32, i32) {
    %c0_i32 = arith.constant 0 : i32
    %c0_i32_0 = arith.constant 0 : i32
    %c0_i32_1 = arith.constant 0 : i32
    return %c0_i32, %c0_i32_0 : i32, i32
  }
  func.func @transform_5(%arg0: i32) -> (i32, i32) {
    %c0_i32 = arith.constant 0 : i32
    %c0_i32_0 = arith.constant 0 : i32
    %c0_i32_1 = arith.constant 0 : i32
    return %c0_i32, %c0_i32_0 : i32, i32
  }
  func.func @transform_6(%arg0: i32) -> (i32, i32) {
    %c0_i32 = arith.constant 0 : i32
    %c0_i32_0 = arith.constant 0 : i32
    %c0_i32_1 = arith.constant 0 : i32
    return %c0_i32, %c0_i32_0 : i32, i32
  }
  func.func @transform_7(%arg0: i32) -> (i32, i32) {
    %c0_i32 = arith.constant 0 : i32
    %c0_i32_0 = arith.constant 0 : i32
    return %c0_i32, %arg0 : i32, i32
  }
}

</mosaic_0001>

<bundles_post_ra>
// kernel: tpu_custom_call.1
= control target key start
LH: loop header
LB: loop body
LE: loop exit
PB: predicated region body
PF: predicated region fallthrough
CT: control target
= control target key end

     0   :  { %s339_s0 = inlined_call_operand.vmem [shape: bf16[4,32], index: 0, kind: input, shape index: {}]   ;;  %s340_s1 = inlined_call_operand.vmem [shape: bf16[8,12], index: 1, kind: input, shape index: {}]   ;;  %s341_s2 = inlined_call_operand.vmem [shape: f32[8,1], index: 2, kind: input, shape index: {}]   ;;  %s342_s3 = inlined_call_operand.vmem [shape: bf16[8,24], index: 3, kind: input, shape index: {}]   ;;  %s343_s4 = inlined_call_operand.vmem [shape: f32[8,1], index: 4, kind: input, shape index: {}]   ;;  %s344_s5 = inlined_call_operand.vmem [shape: bf16[8,4], index: 5, kind: input, shape index: {}]   ;;  %s345_s6 = inlined_call_operand.vmem [shape: f32[8,1], index: 6, kind: input, shape index: {}]   ;;  %s346_s7 = inlined_call_operand.hbm [shape: f32[8,32], index: 7, kind: output, shape index: {}]  }
   0x1   :  { %v28_v0 = vld [vmem:[%s339_s0] sm:$0x3] }
   0x2   :  { %12 = vsyncpa [#allocation3], 0  ;;  %v44_v1 = vunpack.c.l.bf16 %v28_v0  ;;  %s240_s26 = smov 32   ;;  %vm45_vm0 = vcmask 1047808   ;;  %s241_s27 = smov 98   ;;  %v73_v6 = vld [vmem:[%s341_s2] sm:$0xff]  ;;  %v29_v8 = vlaneseq }
   0x3   :  { %s242_s28 = smov 100   ;;  %v243_v7 = vmov 0   ;;  %vm70_vm3 = vcmask 1043456   ;;  %vm83_vm4 = vcmask 1045504   ;;  %v43_v21 = vld [vmem:[%s340_s1] sm:$0xf] }
   0x4   :  { %46 = vrot.lane.b32.xlu0 %v44_v1, %s240_s26  ;;  %211 = vset.pattern.permute.xlu2 %v243_v7  ;;  %v30_v9 = vand.u32 127, %v29_v8  ;;  %vm79_vm5 = vcmask 97280   ;;  %vm161_vm7 = vcmask 1041408   ;;  %v150_v35 = vld [vmem:[%s344_s5] sm:$0xf]  ;;  %vm157_vm8 = vcmask 31744  }
   0x5   :  { %212 = vset.pattern.permute.xlu0 %v243_v7  ;;  %76 = vperm.xlu2 %211, %v73_v6   ;;  %v163_v34 = vsel %vm161_vm7, %v28_v0, 0  ;;  %v121_v36 = vld [vmem:[%s343_s4] sm:$0xff]  ;;  %vm127_vm10 = vcmask 195584   ;;  %s244_s4 = smov [#allocation2]   ;;  %s191_s16 = sshll.u32 %s346_s7, 4  ;;  %vm182_vm13 = vcmask 261120   ;;  %s192_s16 = int_to_ptr.hbm [resolvable:$true] %s191_s16 }
   0x6   :  { %213 = vset.pattern.permute.xlu1 %v243_v7  ;;  %v35_v10 = vand.u32 15, %v30_v9  ;;  %172 = vmatpush.bf16.msra.mxu2 %v163_v34  ;;  %v151_v37 = vld [vmem:[%s345_s6] sm:$0xff]  ;;  %s189_s6 = sshll.u32 %s244_s4, 4  ;;  %s190_s6 = int_to_ptr.vmem [resolvable:$true] %s189_s6 }
   0x7   :  { %v103_v41 = vld [vmem:[%s342_s3] sm:$0xf] }
   0x8   :  { %vm297_vm1 = vcmp.ge.s32.totalorder %v35_v10, 2  ;;  %vm303_vm2 = vcmp.ge.s32.totalorder %v35_v10, 4 }
   0x9   :  { %205 = vmatmul.msk.bf16.vlgmr.msra.gmra.mxu2 %vm157_vm8, %v150_v35  ;;  %vm201_vm9 = vmpackc.low %vm297_vm1, %vm303_vm2 }
  0x5f   :  { %v77_v22 = vpop.permute.xlu2 %76 }
  0x76   :  { %v47_v2 = vpop.permute.xlu0 %46 }
  0x77   :  { %v48_v3 = vsel %vm45_vm0, %v47_v2, %v44_v1 }
  0x78   :  { %49 = vrot.lane.b32.xlu0 %v48_v3, %s240_s26 }
  0x8c   :  { %v174_v42 = vpop.f32.mrf.mxu2 }
  0x94   :  { %v176_v43 = vpop.f32.mrf.mxu2 }
  0xea   :  { %v50_v4 = vpop.permute.xlu0 %49 }
  0xeb   :  { %v51_v5 = vsel %vm45_vm0, %v50_v4, %v44_v1 }
  0xec   :  { %63 = vrot.lane.b32.xlu1 %v51_v5, %s241_s27 }
  0xf4   :  { %56 = vrot.lane.b32.xlu1 %v51_v5, %s242_s28 }
 0x15e   :  { %v64_v11 = vpop.permute.xlu1 %63 }
 0x15f   :  { %v66_v13 = vsel %vm297_vm1, %v64_v11, 0.0 }
 0x160   :  { %v68_v15 = vrot.slane %v66_v13, 4 }
 0x166   :  { %v57_v16 = vpop.permute.xlu1 %56 }
 0x167   :  { %v59_v17 = vsel %vm303_vm2, %v57_v16, 0.0 }
 0x168   :  { %v71_v18 = vsel %vm70_vm3, %v59_v17, %v68_v15 }
 0x169   :  { %v72_v19 = vpack.c.bf16 %v44_v1, %v71_v18 }
 0x16b   :  { %v85_v20 = vsel %vm83_vm4, %v72_v19, 0 }
 0x16c   :  { %94 = vmatpush.bf16.msra.mxu0 %v85_v20 }
 0x16f   :  { %200 = vmatmul.msk.bf16.vlgmr.msra.gmra.mxu0 %vm79_vm5, %v43_v21 }
 0x1ec   :  { %v96_v23 = vpop.f32.mrf.mxu0 }
 0x1ed   :  { %v97_v24 = vadd.f32 %v96_v23, %v77_v22 }
 0x1ef   :  { %vm100_vm6 = vcmp.ge.f32.partialorder %v97_v24, 0.0  ;;  %v101_v25 = vmul.f32 0.01, %v97_v24 }
 0x1f1   :  { %v102_v26 = vsel %vm100_vm6, %v97_v24, %v101_v25 }
 0x1f2   :  { %104 = vrot.lane.b32.xlu2 %v102_v26, %s240_s26  ;;  %v120_v27 = vpack.c.bf16 %v102_v26, %v102_v26 }
 0x1f4   :  { %v98_v28 = vpop.f32.mrf.mxu0  ;;  %v132_v29 = vsel %vm70_vm3, %v120_v27, 0 }
 0x1f5   :  { %140 = vmatpush.bf16.msra.mxu1 %v132_v29 }
 0x24c   :  { %v105_v30 = vpop.permute.xlu2 %104 }
 0x24d   :  { %v106_v31 = vsel %vm45_vm0, %v105_v30, %v102_v26 }
 0x24e   :  { %107 = vrot.lane.b32.xlu0 %v106_v31, %s240_s26 }
 0x256   :  { %124 = vperm.xlu0 %212, %v121_v36  }
 0x2c0   :  { %v108_v32 = vpop.permute.xlu0 %107 }
 0x2c1   :  { %v109_v33 = vsel %vm45_vm0, %v108_v32, %v102_v26 }
 0x2c2   :  { %115 = vrot.lane.b32.xlu2 %v109_v33, %s241_s27  ;;  %111 = vrot.lane.b32.xlu1 %v109_v33, %s242_s28 }
 0x2c8   :  { %v125_v44 = vpop.permute.xlu0 %124 }
 0x2ca   :  { %154 = vperm.xlu1 %213, %v151_v37  }
 0x31c   :  { %v116_v38 = vpop.permute.xlu2 %115 }
 0x334   :  { %v112_v39 = vpop.permute.xlu1 %111 }
 0x335   :  { %v202_v40 = vpack.c.bf16 %v116_v38, %v112_v39 }
 0x337   :  { %203 = vmatpush.bf16.msk.msra.mxu1 %vm201_vm9, %v202_v40 }
 0x33a   :  { %204 = vmatmul.msk.bf16.vlgmr.msra.gmra.mxu1 %vm127_vm10, %v103_v41 }
 0x33c   :  { %v155_v45 = vpop.permute.xlu1 %154 }
 0x33d   :  { %v175_v48 = vadd.f32 %v174_v42, %v155_v45 }
 0x3b7   :  { %v143_v46 = vpop.f32.mrf.mxu1 }
 0x3b8   :  { %v144_v47 = vadd.f32 %v143_v46, %v125_v44 }
 0x3ba   :  { %vm147_vm11 = vcmp.ge.f32.partialorder %v144_v47, 0.0  ;;  %v148_v49 = vmul.f32 0.01, %v144_v47 }
 0x3bc   :  { %v149_v50 = vsel %vm147_vm11, %v144_v47, %v148_v49 }
 0x3bd   :  { %v178_v51 = vadd.f32 %v175_v48, %v149_v50 }
 0x3bf   :  { %v180_v52 = vmul.f32 0.01, %v178_v51  ;;  %v145_v53 = vpop.f32.mrf.mxu1  ;;  %vm179_vm12 = vcmp.ge.f32.partialorder %v178_v51, 0.0 }
 0x3c1   :  { %v181_v54 = vsel %vm179_vm12, %v178_v51, %v180_v52 }
 0x3c2   :  { %183 = vst.msk [vmem:[#allocation2] sm:$0xff] %vm182_vm13, %v181_v54 }
 0x3c3   :  { %194 = dma.vmem_to_hbm [thread:$0]  %s190_s6, 128, %s192_s16, [#allocation3]  }
 0x3c4   :  { %238 = dma.done.wait [#allocation3], 128  }
 0x3c5   :  { %239 = vsyncadd [#allocation3], 4294967168 }
 0x3c6   :  { %199 = vsyncpa [#allocation3], 1 }

</bundles_post_ra>
